<compile_context>
chip_gen: v7x
topology: tpu7x:2x2x1
jax: 0.10.0
libtpu: 0.0.40
codegen_flags: <defaults>
</compile_context>

<pallas_src>
import jax
import jax.numpy as jnp
from jax.experimental import pallas as pl
from jax.experimental.pallas import tpu as pltpu


def _round_up(x, m):
    return ((x + m - 1) // m) * m


def actor_kernel(x_ref, w1_ref, b1_ref, w2_ref, b2_ref, w3_ref, b3_ref, out_ref):
    # x_ref: (TB, S) streams with the grid; weights/biases are VMEM-resident
    # across grid steps (constant index_maps).
    h1 = jnp.maximum(
        jnp.dot(x_ref[...], w1_ref[...], preferred_element_type=jnp.float32)
        + b1_ref[...],
        0.0,
    )
    h2 = jnp.maximum(
        jnp.dot(h1, w2_ref[...], preferred_element_type=jnp.float32) + b2_ref[...],
        0.0,
    )
    out_ref[...] = jnp.tanh(
        jnp.dot(h2, w3_ref[...], preferred_element_type=jnp.float32) + b3_ref[...]
    )


def prepare_actor_params(params):
    """One-time prep: transpose weights to (in, out), biases to (1, out), and
    zero-pad the hidden dim up to a multiple of 128 lanes. Output dim is left
    at action_size (no lane padding) to avoid output HBM write amplification."""
    H = params["w1"].shape[0]
    Hp = _round_up(H, 128)
    dh = Hp - H
    w1 = jnp.pad(params["w1"].T, ((0, 0), (0, dh)))
    b1 = jnp.pad(params["b1"], (0, dh))[None, :]
    w2 = jnp.pad(params["w2"].T, ((0, dh), (0, dh)))
    b2 = jnp.pad(params["b2"], (0, dh))[None, :]
    w3 = jnp.pad(params["w3"].T, ((0, dh), (0, 0)))
    b3 = params["b3"][None, :]
    return {"w1": w1, "b1": b1, "w2": w2, "b2": b2, "w3": w3, "b3": b3}


def _choose_tiling(B, *, cap=4096, min_tiles=2):
    """Big tiles (amortize ~0.35us/grid-step), >= 2 tiles when the batch allows
    (keeps both v7x TensorCores busy), and only a handful of rows of padding."""
    B8 = _round_up(B, 8)
    n_tiles = max(pl.cdiv(B8, cap), min(min_tiles, B8 // 8), 1)
    TB = _round_up(pl.cdiv(B8, n_tiles), 8)
    n_tiles = pl.cdiv(B8, TB)
    return TB, n_tiles, n_tiles * TB


@jax.jit
def actor_forward(state, prepared):
    """state: (B, state_size) f32. prepared: output of prepare_actor_params."""
    B, S = state.shape
    Hp = prepared["w1"].shape[1]
    A = prepared["w3"].shape[1]

    TB, n_tiles, B_pad = _choose_tiling(B)
    if B_pad != B:
        state = jnp.pad(state, ((0, B_pad - B), (0, 0)))

    cost = pl.CostEstimate(
        flops=2 * B_pad * (S * Hp + Hp * Hp + Hp * A),
        transcendentals=B_pad * A,
        bytes_accessed=4 * (B_pad * (S + A) + S * Hp + Hp * Hp + Hp * A + 2 * Hp + A),
    )

    out = pl.pallas_call(
        actor_kernel,
        out_shape=jax.ShapeDtypeStruct((B_pad, A), jnp.float32),
        grid_spec=pltpu.PrefetchScalarGridSpec(
            num_scalar_prefetch=0,
            grid=(n_tiles,),
            in_specs=[
                pl.BlockSpec((TB, S), lambda i: (i, 0)),     # x: streams with i
                pl.BlockSpec((S, Hp), lambda i: (0, 0)),     # w1: VMEM-resident
                pl.BlockSpec((1, Hp), lambda i: (0, 0)),     # b1: resident
                pl.BlockSpec((Hp, Hp), lambda i: (0, 0)),    # w2: resident
                pl.BlockSpec((1, Hp), lambda i: (0, 0)),     # b2: resident
                pl.BlockSpec((Hp, A), lambda i: (0, 0)),     # w3: resident
                pl.BlockSpec((1, A), lambda i: (0, 0)),      # b3: resident
            ],
            out_specs=pl.BlockSpec((TB, A), lambda i: (i, 0)),
        ),
        compiler_params=pltpu.CompilerParams(
            dimension_semantics=("parallel",),  # shard batch tiles across v7x's 2 TCs
        ),
        cost_estimate=cost,
    )(state, prepared["w1"], prepared["b1"], prepared["w2"], prepared["b2"],
      prepared["w3"], prepared["b3"])

    return out if B_pad == B else out[:B]


def init_actor_params(key, state_size, action_size, hidden_size=64):
    """Deterministic init mimicking nn.Linear default U(-1/sqrt(fan_in), 1/sqrt(fan_in))."""
    def linear(k, fan_in, fan_out):
        kw, kb = jax.random.split(k)
        bound = 1.0 / jnp.sqrt(fan_in)
        w = jax.random.uniform(kw, (fan_out, fan_in), jnp.float32, -bound, bound)
        b = jax.random.uniform(kb, (fan_out,), jnp.float32, -bound, bound)
        return w, b

    k1, k2, k3 = jax.random.split(key, 3)
    w1, b1 = linear(k1, state_size, hidden_size)
    w2, b2 = linear(k2, hidden_size, hidden_size)
    w3, b3 = linear(k3, hidden_size, action_size)
    return {"w1": w1, "b1": b1, "w2": w2, "b2": b2, "w3": w3, "b3": b3}


def actor_reference(state, params):
    """Pure-JAX reference matching the PyTorch forward."""
    x = jnp.maximum(state @ params["w1"].T + params["b1"], 0.0)
    x = jnp.maximum(x @ params["w2"].T + params["b2"], 0.0)
    return jnp.tanh(x @ params["w3"].T + params["b3"])


if __name__ == "__main__":
    key = jax.random.PRNGKey(0)
    k_params, k_state_small, k_state_big, k_state_ragged = jax.random.split(key, 4)

    state_size = 16
    action_size = 4
    hidden_size = 64

    params = init_actor_params(k_params, state_size, action_size, hidden_size)
    prepared = prepare_actor_params(params)  # one-time: transposes + hidden-dim lane padding

    # Small batch (single grid step).
    state_small = jax.random.normal(k_state_small, (8, state_size), dtype=jnp.float32)
    out_small = actor_forward(state_small, prepared)
    jax.block_until_ready(out_small)
    ref_small = actor_reference(state_small, params)
    assert out_small.shape == (8, action_size)
    assert jnp.allclose(out_small, ref_small, atol=1e-5, rtol=1e-5), "small-batch mismatch"

    # Larger batch exercising the 2-tile parallel batch grid with resident weights.
    state_big = jax.random.normal(k_state_big, (1024, state_size), dtype=jnp.float32)
    out_big = actor_forward(state_big, prepared)
    jax.block_until_ready(out_big)
    ref_big = actor_reference(state_big, params)
    assert out_big.shape == (1024, action_size)
    assert jnp.allclose(out_big, ref_big, atol=1e-5, rtol=1e-5), "large-batch mismatch"

    # Ragged batch (not a multiple of 8) exercising the minimal-padding path.
    state_ragged = jax.random.normal(k_state_ragged, (37, state_size), dtype=jnp.float32)
    out_ragged = actor_forward(state_ragged, prepared)
    jax.block_until_ready(out_ragged)
    ref_ragged = actor_reference(state_ragged, params)
    assert out_ragged.shape == (37, action_size)
    assert jnp.allclose(out_ragged, ref_ragged, atol=1e-5, rtol=1e-5), "ragged-batch mismatch"

    print("KERNEL_OK")
</pallas_src>

<mosaic_0001>
module attributes {stable_mosaic.version = 11 : i64} {
  func.func @actor_kernel(%arg0: i32, %arg1: memref<8x16xf32, #tpu.memory_space<vmem>>, %arg2: memref<16x128xf32, #tpu.memory_space<vmem>>, %arg3: memref<1x128xf32, #tpu.memory_space<vmem>>, %arg4: memref<128x128xf32, #tpu.memory_space<vmem>>, %arg5: memref<1x128xf32, #tpu.memory_space<vmem>>, %arg6: memref<128x4xf32, #tpu.memory_space<vmem>>, %arg7: memref<1x4xf32, #tpu.memory_space<vmem>>, %arg8: memref<8x4xf32, #tpu.memory_space<vmem>>) attributes {dimension_semantics = [#tpu.dimension_semantics<parallel>], iteration_bounds = array<i64: 1>, scalar_prefetch = 0 : i64, scratch_operands = 0 : i64, tpu.core_type = #tpu.core_type<tc>, window_params = [{transform_indices = @transform_0, window_bounds = array<i64: 8, 16>}, {pipeline_mode = #tpu.pipeline_mode<synchronous>, transform_indices = @transform_1, window_bounds = array<i64: 16, 128>}, {pipeline_mode = #tpu.pipeline_mode<synchronous>, transform_indices = @transform_2, window_bounds = array<i64: 1, 128>}, {pipeline_mode = #tpu.pipeline_mode<synchronous>, transform_indices = @transform_3, window_bounds = array<i64: 128, 128>}, {pipeline_mode = #tpu.pipeline_mode<synchronous>, transform_indices = @transform_4, window_bounds = array<i64: 1, 128>}, {pipeline_mode = #tpu.pipeline_mode<synchronous>, transform_indices = @transform_5, window_bounds = array<i64: 128, 4>}, {pipeline_mode = #tpu.pipeline_mode<synchronous>, transform_indices = @transform_6, window_bounds = array<i64: 1, 4>}, {transform_indices = @transform_7, window_bounds = array<i64: 8, 4>}]} {
    %c0 = arith.constant 0 : index
    %c0_0 = arith.constant 0 : index
    %0 = vector.load %arg1[%c0, %c0_0] : memref<8x16xf32, #tpu.memory_space<vmem>>, vector<8x16xf32>
    %c0_1 = arith.constant 0 : index
    %c0_2 = arith.constant 0 : index
    %1 = vector.load %arg2[%c0_1, %c0_2] : memref<16x128xf32, #tpu.memory_space<vmem>>, vector<16x128xf32>
    %cst = arith.constant dense<0.000000e+00> : vector<8x128xf32>
    %2 = tpu.matmul %0, %1, %cst {dimension_numbers = #tpu.dot_dimension_numbers<[1], [0], [0], [1], [0, 0, 1, 1], [], []>} : vector<8x16xf32>, vector<16x128xf32>, vector<8x128xf32> -> vector<8x128xf32>
    %c0_3 = arith.constant 0 : index
    %c0_4 = arith.constant 0 : index
    %3 = vector.load %arg3[%c0_3, %c0_4] : memref<1x128xf32, #tpu.memory_space<vmem>>, vector<1x128xf32>
    %4 = vector.broadcast %3 : vector<1x128xf32> to vector<8x128xf32>
    %5 = arith.addf %2, %4 : vector<8x128xf32>
    %cst_5 = arith.constant 0.000000e+00 : f32
    %6 = vector.broadcast %cst_5 : f32 to vector<8x128xf32>
    %7 = arith.maximumf %5, %6 : vector<8x128xf32>
    %c0_6 = arith.constant 0 : index
    %c0_7 = arith.constant 0 : index
    %8 = vector.load %arg4[%c0_6, %c0_7] : memref<128x128xf32, #tpu.memory_space<vmem>>, vector<128x128xf32>
    %cst_8 = arith.constant dense<0.000000e+00> : vector<8x128xf32>
    %9 = tpu.matmul %7, %8, %cst_8 {dimension_numbers = #tpu.dot_dimension_numbers<[1], [0], [0], [1], [0, 0, 1, 1], [], []>} : vector<8x128xf32>, vector<128x128xf32>, vector<8x128xf32> -> vector<8x128xf32>
    %c0_9 = arith.constant 0 : index
    %c0_10 = arith.constant 0 : index
    %10 = vector.load %arg5[%c0_9, %c0_10] : memref<1x128xf32, #tpu.memory_space<vmem>>, vector<1x128xf32>
    %11 = vector.broadcast %10 : vector<1x128xf32> to vector<8x128xf32>
    %12 = arith.addf %9, %11 : vector<8x128xf32>
    %cst_11 = arith.constant 0.000000e+00 : f32
    %13 = vector.broadcast %cst_11 : f32 to vector<8x128xf32>
    %14 = arith.maximumf %12, %13 : vector<8x128xf32>
    %c0_12 = arith.constant 0 : index
    %c0_13 = arith.constant 0 : index
    %15 = vector.load %arg6[%c0_12, %c0_13] : memref<128x4xf32, #tpu.memory_space<vmem>>, vector<128x4xf32>
    %cst_14 = arith.constant dense<0.000000e+00> : vector<8x4xf32>
    %16 = tpu.matmul %14, %15, %cst_14 {dimension_numbers = #tpu.dot_dimension_numbers<[1], [0], [0], [1], [0, 0, 1, 1], [], []>} : vector<8x128xf32>, vector<128x4xf32>, vector<8x4xf32> -> vector<8x4xf32>
    %c0_15 = arith.constant 0 : index
    %c0_16 = arith.constant 0 : index
    %17 = vector.load %arg7[%c0_15, %c0_16] : memref<1x4xf32, #tpu.memory_space<vmem>>, vector<1x4xf32>
    %18 = vector.broadcast %17 : vector<1x4xf32> to vector<8x4xf32>
    %19 = arith.addf %16, %18 : vector<8x4xf32>
    %20 = math.tanh %19 : vector<8x4xf32>
    %c0_17 = arith.constant 0 : index
    %c0_18 = arith.constant 0 : index
    %21 = vector.load %arg8[%c0_17, %c0_18] : memref<8x4xf32, #tpu.memory_space<vmem>>, vector<8x4xf32>
    tpu.vector_store %arg8[%c0_17, %c0_18], %20 {strides = array<i32>} : memref<8x4xf32, #tpu.memory_space<vmem>>, vector<8x4xf32>,
    return
  }
  func.func @transform_0(%arg0: i32) -> (i32, i32) {
    %c0_i32 = arith.constant 0 : i32
    %c0_i32_0 = arith.constant 0 : i32
    return %arg0, %c0_i32 : i32, i32
  }
  func.func @transform_1(%arg0: i32) -> (i32, i32) {
    %c0_i32 = arith.constant 0 : i32
    %c0_i32_0 = arith.constant 0 : i32
    %c0_i32_1 = arith.constant 0 : i32
    return %c0_i32, %c0_i32_0 : i32, i32
  }
  func.func @transform_2(%arg0: i32) -> (i32, i32) {
    %c0_i32 = arith.constant 0 : i32
    %c0_i32_0 = arith.constant 0 : i32
    %c0_i32_1 = arith.constant 0 : i32
    return %c0_i32, %c0_i32_0 : i32, i32
  }
  func.func @transform_3(%arg0: i32) -> (i32, i32) {
    %c0_i32 = arith.constant 0 : i32
    %c0_i32_0 = arith.constant 0 : i32
    %c0_i32_1 = arith.constant 0 : i32
    return %c0_i32, %c0_i32_0 : i32, i32
  }
  func.func @transform_4(%arg0: i32) -> (i32, i32) {
    %c0_i32 = arith.constant 0 : i32
    %c0_i32_0 = arith.constant 0 : i32
    %c0_i32_1 = arith.constant 0 : i32
    return %c0_i32, %c0_i32_0 : i32, i32
  }
  func.func @transform_5(%arg0: i32) -> (i32, i32) {
    %c0_i32 = arith.constant 0 : i32
    %c0_i32_0 = arith.constant 0 : i32
    %c0_i32_1 = arith.constant 0 : i32
    return %c0_i32, %c0_i32_0 : i32, i32
  }
  func.func @transform_6(%arg0: i32) -> (i32, i32) {
    %c0_i32 = arith.constant 0 : i32
    %c0_i32_0 = arith.constant 0 : i32
    %c0_i32_1 = arith.constant 0 : i32
    return %c0_i32, %c0_i32_0 : i32, i32
  }
  func.func @transform_7(%arg0: i32) -> (i32, i32) {
    %c0_i32 = arith.constant 0 : i32
    %c0_i32_0 = arith.constant 0 : i32
    return %arg0, %c0_i32 : i32, i32
  }
}

</mosaic_0001>

<bundles_post_ra>
// kernel: actor_forward.1
= control target key start
LH: loop header
LB: loop body
LE: loop exit
PB: predicated region body
PF: predicated region fallthrough
CT: control target
= control target key end

     0   :  { %12 = vsyncpa [#allocation3], 0  ;;  %s517_s24 = smov [#allocation2]   ;;  %s707_s0 = inlined_call_operand.hbm [shape: f32[8,16], index: 0, kind: input, shape index: {}]   ;;  %s708_s1 = inlined_call_operand.vmem [shape: f32[16,128], index: 1, kind: input, shape index: {}]   ;;  %s709_s2 = inlined_call_operand.vmem [shape: f32[1,128], index: 2, kind: input, shape index: {}]   ;;  %s710_s3 = inlined_call_operand.vmem [shape: f32[128,128], index: 3, kind: input, shape index: {}]   ;;  %s711_s4 = inlined_call_operand.vmem [shape: f32[1,128], index: 4, kind: input, shape index: {}]   ;;  %s712_s5 = inlined_call_operand.vmem [shape: f32[128,4], index: 5, kind: input, shape index: {}]   ;;  %s713_s6 = inlined_call_operand.vmem [shape: f32[1,4], index: 6, kind: input, shape index: {}]   ;;  %s714_s7 = inlined_call_operand.vmem [shape: f32[8,4], index: 7, kind: output, shape index: {}]  }
   0x1   :  { %s19_s25 = sshll.u32 %s517_s24, 4  ;;  %s493_s28 = scalar_lea.hbm %s707_s0, 128  ;;  %s20_s25 = int_to_ptr.vmem [resolvable:$true] %s19_s25 }
   0x2   :  { %p494_p0 = scmp.ne.s32.totalorder %s707_s0, %s493_s28  ;;  %p497_p1 = scmp.lt.u32.totalorder %s493_s28, %s707_s0 }
   0x4   :  { %p499_p2 = pnand %p497_p1, %p494_p0 }
   0x6   :  { %502 = shalt.err (!%p499_p2)
}
   0x7   :  { %s503_s10 = scalar_lea.vmem %s20_s25, 128  ;;  %p508_p4 = scmp.lt.s32.totalorder %s20_s25, %s20_s25 }
   0x8   :  { %p504_p3 = scmp.ne.s32.totalorder %s20_s25, %s503_s10  ;;  %p509_p5 = scmp.lt.s32.totalorder %s503_s10, %s503_s10 }
   0xa   :  { %p510_p6 = por %p509_p5, %p508_p4 }
   0xc   :  { %p511_p7 = pnand %p510_p6, %p504_p3 }
   0xe   :  { %514 = shalt.err (!%p511_p7)
}
   0xf   :  { %22 = dma.hbm_to_vmem [thread:$0]  %s707_s0, 128, %s20_s25, [#allocation3]  }
  0x10   :  { %515 = dma.done.wait [#allocation3], 128  }
  0x11   :  { %516 = vsyncadd [#allocation3], 4294967168  ;;  %v518_v0 = vmov 0.0|0.0   ;;  %vm519_vm0 = vmmov 0   ;;  %v520_v1 = vmov 0.0   ;;  %v39_v2 = vld [vmem:[%s708_s1] sm:$0xff] }
  0x12   :  { %436 = vmatprep.subr.bf16.mxu0 %v518_v0  ;;  %363 = vmatprep.mubr.msk.f32.mxu0 %vm519_vm0, %v520_v1  ;;  %v40_v3 = vld [vmem:[%s708_s1 + $0x8] sm:$0xff]  ;;  %v123_v5 = vld [vmem:[%s710_s3] sm:$0xff]  ;;  %v125_v7 = vld [vmem:[%s710_s3 + $0x10] sm:$0xff]  ;;  %vm48_vm1 = vcmask 130048   ;;  %vm311_vm2 = vcmask 31744  }
  0x13   :  { %439 = vmatprep.subr.bf16.mxu1 %v518_v0  ;;  %398 = vmatprep.mubr.msk.f32.mxu1 %vm519_vm0, %v520_v1  ;;  %v437_v4 = vpack.c.bf16 %v40_v3, %v39_v2  ;;  %v124_v6 = vld [vmem:[%s710_s3 + $0x8] sm:$0xff]  ;;  %v126_v9 = vld [vmem:[%s710_s3 + $0x18] sm:$0xff]  ;;  %v38_v10 = vld [vmem:[#allocation2] sm:$0xff] }
  0x14   :  { %v440_v8 = vpack.c.bf16 %v124_v6, %v123_v5  ;;  %v443_v11 = vpack.c.bf16 %v126_v9, %v125_v7  ;;  %v127_v12 = vld [vmem:[%s710_s3 + $0x20] sm:$0xff]  ;;  %v128_v13 = vld [vmem:[%s710_s3 + $0x28] sm:$0xff]  ;;  %v129_v15 = vld [vmem:[%s710_s3 + $0x30] sm:$0xff] }
  0x15   :  { %438 = vmatpush3.bf16.msra.mxu0 %v437_v4  ;;  %v446_v14 = vpack.c.bf16 %v128_v13, %v127_v12  ;;  %v130_v16 = vld [vmem:[%s710_s3 + $0x38] sm:$0xff]  ;;  %v131_v18 = vld [vmem:[%s710_s3 + $0x40] sm:$0xff]  ;;  %v132_v19 = vld [vmem:[%s710_s3 + $0x48] sm:$0xff] }
  0x16   :  { %441 = vmatpush3.bf16.msra.mxu1 %v440_v8  ;;  %463 = vmatprep.subr.bf16.mxu0 %v518_v0  ;;  %v449_v17 = vpack.c.bf16 %v130_v16, %v129_v15  ;;  %v452_v20 = vpack.c.bf16 %v132_v19, %v131_v18  ;;  %v133_v21 = vld [vmem:[%s710_s3 + $0x50] sm:$0xff]  ;;  %v134_v22 = vld [vmem:[%s710_s3 + $0x58] sm:$0xff]  ;;  %v135_v24 = vld [vmem:[%s710_s3 + $0x60] sm:$0xff] }
  0x17   :  { %442 = vmatprep.subr.bf16.mxu1 %v518_v0  ;;  %v455_v23 = vpack.c.bf16 %v134_v22, %v133_v21  ;;  %v136_v25 = vld [vmem:[%s710_s3 + $0x68] sm:$0xff]  ;;  %v137_v27 = vld [vmem:[%s710_s3 + $0x70] sm:$0xff]  ;;  %v138_v28 = vld [vmem:[%s710_s3 + $0x78] sm:$0xff] }
  0x18   :  { %364 = vmatmul.mubr.msk.f32.vlgmr.msra.gmra.mrb[0].mxu0 %vm48_vm1, %v38_v10  ;;  %v458_v26 = vpack.c.bf16 %v136_v25, %v135_v24  ;;  %v461_v29 = vpack.c.bf16 %v138_v28, %v137_v27  ;;  %v217_v30 = vld [vmem:[%s712_s5] sm:$0xff]  ;;  %v218_v31 = vld [vmem:[%s712_s5 + $0x8] sm:$0xff]  ;;  %v219_v32 = vld [vmem:[%s712_s5 + $0x10] sm:$0xff] }
  0x19   :  { %433 = vmatprep.mubr.msk.f32.mxu0 %vm519_vm0, %v520_v1  ;;  %v464_v33 = vpack.c.bf16 %v218_v31, %v217_v30  ;;  %v220_v34 = vld [vmem:[%s712_s5 + $0x18] sm:$0xff]  ;;  %v221_v36 = vld [vmem:[%s712_s5 + $0x20] sm:$0xff]  ;;  %v222_v37 = vld [vmem:[%s712_s5 + $0x28] sm:$0xff] }
  0x1a   :  { %444 = vmatpush3.bf16.msra.mxu1 %v443_v11  ;;  %v467_v35 = vpack.c.bf16 %v220_v34, %v219_v32  ;;  %v470_v38 = vpack.c.bf16 %v222_v37, %v221_v36  ;;  %v223_v39 = vld [vmem:[%s712_s5 + $0x30] sm:$0xff]  ;;  %v224_v40 = vld [vmem:[%s712_s5 + $0x38] sm:$0xff]  ;;  %v225_v42 = vld [vmem:[%s712_s5 + $0x40] sm:$0xff] }
  0x1b   :  { %445 = vmatprep.subr.bf16.mxu1 %v518_v0  ;;  %465 = vmatpush3.bf16.msra.mxu0 %v464_v33  ;;  %v473_v41 = vpack.c.bf16 %v224_v40, %v223_v39  ;;  %v226_v43 = vld [vmem:[%s712_s5 + $0x48] sm:$0xff]  ;;  %v227_v45 = vld [vmem:[%s712_s5 + $0x50] sm:$0xff]  ;;  %v228_v46 = vld [vmem:[%s712_s5 + $0x58] sm:$0xff] }
  0x1c   :  { %466 = vmatprep.subr.bf16.mxu0 %v518_v0  ;;  %v476_v44 = vpack.c.bf16 %v226_v43, %v225_v42  ;;  %v479_v47 = vpack.c.bf16 %v228_v46, %v227_v45  ;;  %v229_v48 = vld [vmem:[%s712_s5 + $0x60] sm:$0xff]  ;;  %v230_v49 = vld [vmem:[%s712_s5 + $0x68] sm:$0xff]  ;;  %v231_v56 = vld [vmem:[%s712_s5 + $0x70] sm:$0xff] }
  0x1d   :  { %v482_v50 = vpack.c.bf16 %v230_v49, %v229_v48  ;;  %v318_v51 = vld [vmem:[%s709_s2] ss:$0 sm:$0xff]  ;;  %v232_v57 = vld [vmem:[%s712_s5 + $0x78] sm:$0xff] }
  0x1e   :  { %447 = vmatpush3.bf16.msra.mxu1 %v446_v14  ;;  %v485_v58 = vpack.c.bf16 %v232_v57, %v231_v56  ;;  %v320_v59 = vld [vmem:[%s711_s4] ss:$0 sm:$0xff] }
  0x1f   :  { %448 = vmatprep.subr.bf16.mxu1 %v518_v0  ;;  %468 = vmatpush3.bf16.msra.mxu0 %v467_v35 }
  0x20   :  { %469 = vmatprep.subr.bf16.mxu0 %v518_v0 }
  0x22   :  { %450 = vmatpush3.bf16.msra.mxu1 %v449_v17 }
  0x23   :  { %451 = vmatprep.subr.bf16.mxu1 %v518_v0  ;;  %471 = vmatpush3.bf16.msra.mxu0 %v470_v38 }
  0x24   :  { %472 = vmatprep.subr.bf16.mxu0 %v518_v0 }
  0x26   :  { %453 = vmatpush3.bf16.msra.mxu1 %v452_v20 }
  0x27   :  { %454 = vmatprep.subr.bf16.mxu1 %v518_v0  ;;  %474 = vmatpush3.bf16.msra.mxu0 %v473_v41 }
  0x28   :  { %475 = vmatprep.subr.bf16.mxu0 %v518_v0 }
  0x2a   :  { %456 = vmatpush3.bf16.msra.mxu1 %v455_v23 }
  0x2b   :  { %457 = vmatprep.subr.bf16.mxu1 %v518_v0  ;;  %477 = vmatpush3.bf16.msra.mxu0 %v476_v44 }
  0x2c   :  { %478 = vmatprep.subr.bf16.mxu0 %v518_v0 }
  0x2e   :  { %459 = vmatpush3.bf16.msra.mxu1 %v458_v26 }
  0x2f   :  { %460 = vmatprep.subr.bf16.mxu1 %v518_v0  ;;  %480 = vmatpush3.bf16.msra.mxu0 %v479_v47 }
  0x30   :  { %481 = vmatprep.subr.bf16.mxu0 %v518_v0 }
  0x32   :  { %462 = vmatpush3.bf16.msra.mxu1 %v461_v29 }
  0x33   :  { %483 = vmatpush3.bf16.msra.mxu0 %v482_v50 }
  0x34   :  { %484 = vmatprep.subr.bf16.mxu0 %v518_v0  ;;  %v321_v0 = vld [vmem:[%s713_s6] ss:$0 sm:$0xff] }
  0x37   :  { %486 = vmatpush3.bf16.msra.mxu0 %v485_v58 }
  0xeb   :  { %v118_v52 = vpop.f32.mrb[0].mxu0 }
  0xec   :  { %v119_v53 = vadd.f32 %v318_v51, %v118_v52  ;;  %v365_v54 = vpop.f32.mrb[1].mxu0 }
  0xee   :  { %v122_v55 = vmax.f32 %v119_v53, 0.0 }
  0xf0   :  { %399 = vmatmul.mubr.f32.vlgmr.msra.gmra.mrb[0].mxu1 %v122_v55 }
 0x1c3   :  { %v212_v60 = vpop.f32.mrb[0].mxu1 }
 0x1c4   :  { %v213_v61 = vadd.f32 %v320_v59, %v212_v60  ;;  %v400_v62 = vpop.f32.mrb[1].mxu1 }
 0x1c6   :  { %v216_v63 = vmax.f32 %v213_v61, 0.0 }
 0x1c8   :  { %434 = vmatmul.mubr.f32.vlgmr.msra.gmra.mrb[2].mxu0 %v216_v63 }
 0x29b   :  { %v306_v1 = vpop.f32.mrb[2].mxu0 }
 0x29c   :  { %v307_v2 = vadd.f32 %v321_v0, %v306_v1  ;;  %v435_v3 = vpop.f32.mrb[3].mxu0 }
 0x29e   :  { %491 = vtanh.f32 %v307_v2 }
 0x2a8   :  { %v492_v4 = vpop.eup %491 }
 0x2a9   :  { %312 = vst.msk [vmem:[%s714_s7] sm:$0xff] %vm311_vm2, %v492_v4 }
 0x2aa   :  { %317 = vsyncpa [#allocation3], 1 }

</bundles_post_ra>
